<compile_context>
chip_gen: v7x
topology: tpu7x:2x2x1
jax: 0.10.0
libtpu: 0.0.40
codegen_flags: <defaults>
</compile_context>

<pallas_src>
import functools

import numpy as np
import jax
import jax.numpy as jnp
from jax import lax
from jax.experimental import pallas as pl
from jax.experimental.pallas import tpu as pltpu

BN_EPS = 1e-5


# ------------------------------ Pallas kernel ---------------------------------
def _basic_block_kernel(x_ref, w1_ref, w2_ref, sh1_ref, sh2_ref, mask_ref,
                        o_ref, *, taps, lp):
    """One grid step: x_ref (Cin, LP) f32 -> o_ref (Cout, LP) f32.

    LP = (#images this step) * lane-padded flat spatial size.  A 3x3 conv is a
    single MXU dot with K = 9*Cin over a rolled-tap stack.
    """
    x32 = x_ref[...]                                    # (Cin, LP) f32, residual path

    def conv3x3(act_f32, w_ref):
        # Tap stack (9*C, LP): static lane rolls (XLU slot, idle here) -> one
        # K = 9*C MXU dot with bf16 operands and f32 accumulation.
        stack = jnp.concatenate(
            [act_f32 if d == 0 else pltpu.roll(act_f32, (-d) % lp, axis=1)
             for d in taps],
            axis=0).astype(jnp.bfloat16)
        return jnp.dot(w_ref[...], stack, preferred_element_type=jnp.float32)

    # conv1 + folded BN1 + ReLU.  The mask zeroes the padding ring (and the
    # lane tail) of every image so conv2 sees a correctly zero-padded input.
    out1 = jnp.maximum(conv3x3(x32, w1_ref) + sh1_ref[...], 0.0) * mask_ref[...]

    # conv2 + folded BN2 + f32 identity residual + ReLU.
    out2 = conv3x3(out1, w2_ref) + sh2_ref[...] + x32
    o_ref[...] = jnp.maximum(out2, 0.0)


# --------------------------------- wrapper -------------------------------------
def basic_block_forward(x_nchw, params):
    """BasicBlock.forward (stride=1, downsample=None -- the module defaults)."""
    # TODO(synk): stride != 1 / a downsample submodule are not provided by the
    # default config; the residual here is the identity (inplanes == planes).
    x = x_nchw.astype(jnp.float32)
    n, cin, h, w = x.shape
    cout = params["w1"].shape[0]
    assert cin == cout, "identity residual requires inplanes == planes"

    hp, wp = h + 2, w + 2                       # zero-padded spatial dims
    l_img = hp * wp                             # flat padded spatial size
    l_lane = pl.cdiv(l_img, 128) * 128          # lane-aligned per-image width

    # Fold inference BatchNorm into the conv weights / per-channel shift:
    #   (conv_W(x) + b) * s + t == conv_{W*s}(x) + (b*s + beta - m*s),
    #   with s = g / sqrt(v + eps).
    def fold(wgt, b, g, beta, mean, var):
        s = g / jnp.sqrt(var + BN_EPS)                               # (cout,)
        w_s = wgt * s[:, None, None, None]                           # OIHW, scaled
        shift = (b * s + beta - mean * s).reshape(cout, 1).astype(jnp.float32)
        # (cout, 9*cin); column order (kh, kw, cin) matches the kernel tap stack.
        w2d = jnp.transpose(w_s, (0, 2, 3, 1)).reshape(cout, -1)
        return w2d.astype(jnp.bfloat16), shift

    w1_t, sh1 = fold(params["w1"], params["b1"], params["g1"], params["be1"],
                     params["m1"], params["v1"])
    w2_t, sh2 = fold(params["w2"], params["b2"], params["g2"], params["be2"],
                     params["m2"], params["v2"])

    # Channels-major, flattened zero-padded spatial layout (no halo): f32 once.
    x_flat = jnp.pad(x, ((0, 0), (0, 0), (1, 1), (1, 1))).reshape(n, cin, l_img)
    x_flat = jnp.pad(x_flat, ((0, 0), (0, 0), (0, l_lane - l_img)))

    # Fold the batch into the lane axis; keep 2 "parallel" grid steps when the
    # batch is even so both v7x TensorCores get work (v5e/v6e: 2 cheap steps).
    n_steps = 2 if (n >= 2 and n % 2 == 0) else 1
    imgs = n // n_steps
    lp = imgs * l_lane
    x_blk = (x_flat.reshape(n_steps, imgs, cin, l_lane)
             .transpose(0, 2, 1, 3).reshape(n_steps, cin, lp))

    # Interior mask over the flat padded positions (1 inside each image, else 0).
    hh = (jnp.arange(hp) >= 1) & (jnp.arange(hp) <= h)
    ww = (jnp.arange(wp) >= 1) & (jnp.arange(wp) <= w)
    m_img = jnp.pad((hh[:, None] & ww[None, :]).reshape(l_img).astype(jnp.float32),
                    (0, l_lane - l_img))
    mask = jnp.tile(m_img, imgs).reshape(1, lp)

    # Static tap offsets in the flat padded layout, ordered (kh, kw).
    taps = tuple((kh - 1) * wp + (kw - 1) for kh in range(3) for kw in range(3))

    kernel = functools.partial(_basic_block_kernel, taps=taps, lp=lp)
    out_blk = pl.pallas_call(
        kernel,
        out_shape=jax.ShapeDtypeStruct((n_steps, cout, lp), jnp.float32),
        grid_spec=pltpu.PrefetchScalarGridSpec(
            num_scalar_prefetch=0,
            grid=(n_steps,),
            in_specs=[
                pl.BlockSpec((None, cin, lp), lambda i: (i, 0, 0)),   # activations (f32)
                pl.BlockSpec((cout, 9 * cin), lambda i: (0, 0)),      # conv1 taps (resident)
                pl.BlockSpec((cout, 9 * cout), lambda i: (0, 0)),     # conv2 taps (resident)
                pl.BlockSpec((cout, 1), lambda i: (0, 0)),            # folded shift 1
                pl.BlockSpec((cout, 1), lambda i: (0, 0)),            # folded shift 2
                pl.BlockSpec((1, lp), lambda i: (0, 0)),              # interior mask
            ],
            out_specs=pl.BlockSpec((None, cout, lp), lambda i: (i, 0, 0)),
        ),
        compiler_params=pltpu.CompilerParams(dimension_semantics=("parallel",)),
    )(x_blk, w1_t, w2_t, sh1, sh2, mask)

    # Un-fold the batch, drop the lane tail and the padding ring -> NCHW.
    out = (out_blk.reshape(n_steps, cout, imgs, l_lane)
           .transpose(0, 2, 1, 3).reshape(n, cout, l_lane))
    return out[:, :, :l_img].reshape(n, cout, hp, wp)[:, :, 1:h + 1, 1:w + 1]


# --------------------------- pure-JAX reference ---------------------------------
def reference_forward(x_nchw, params):
    x = x_nchw.astype(jnp.float32)

    def conv(v, wgt, b):
        out = lax.conv_general_dilated(
            v, wgt, window_strides=(1, 1), padding=((1, 1), (1, 1)),
            dimension_numbers=("NCHW", "OIHW", "NCHW"),
            precision=lax.Precision.HIGHEST)
        return out + b.reshape(1, -1, 1, 1)

    def bn(v, g, beta, m, var):
        return ((v - m.reshape(1, -1, 1, 1)) / jnp.sqrt(var.reshape(1, -1, 1, 1) + BN_EPS)
                * g.reshape(1, -1, 1, 1) + beta.reshape(1, -1, 1, 1))

    out = jnp.maximum(bn(conv(x, params["w1"], params["b1"]),
                         params["g1"], params["be1"], params["m1"], params["v1"]), 0.0)
    out = bn(conv(out, params["w2"], params["b2"]),
             params["g2"], params["be2"], params["m2"], params["v2"])
    return jnp.maximum(out + x, 0.0)


# ------------------------------------ main ---------------------------------------
if __name__ == "__main__":
    # inplanes = planes = 8, stride = 1, downsample = None (module defaults)
    N, C, H, W = 2, 8, 16, 16
    key = jax.random.PRNGKey(0)
    ks = jax.random.split(key, 11)

    x = jax.random.normal(ks[0], (N, C, H, W), jnp.float32)

    def xavier_3x3(k, cin, cout):
        # nn.init.xavier_uniform_ for a (cout, cin, 3, 3) conv kernel (OIHW)
        limit = float(np.sqrt(6.0 / (cin * 9 + cout * 9)))
        return jax.random.uniform(k, (cout, cin, 3, 3), jnp.float32, -limit, limit)

    # Deterministic synthetic parameters.  BatchNorm is in inference mode
    # (running stats folded); stats randomized so the BN math is exercised.
    params = {
        "w1": xavier_3x3(ks[1], C, C),
        "b1": jnp.zeros((C,), jnp.float32),        # nn.init.constant_(bias, 0)
        "w2": xavier_3x3(ks[2], C, C),
        "b2": jnp.zeros((C,), jnp.float32),
        "g1": jax.random.uniform(ks[3], (C,), jnp.float32, 0.5, 1.5),
        "be1": 0.1 * jax.random.normal(ks[4], (C,), jnp.float32),
        "m1": 0.1 * jax.random.normal(ks[5], (C,), jnp.float32),
        "v1": jax.random.uniform(ks[6], (C,), jnp.float32, 0.5, 1.5),
        "g2": jax.random.uniform(ks[7], (C,), jnp.float32, 0.5, 1.5),
        "be2": 0.1 * jax.random.normal(ks[8], (C,), jnp.float32),
        "m2": 0.1 * jax.random.normal(ks[9], (C,), jnp.float32),
        "v2": jax.random.uniform(ks[10], (C,), jnp.float32, 0.5, 1.5),
    }

    y = jax.block_until_ready(basic_block_forward(x, params))
    y_ref = jax.block_until_ready(reference_forward(x, params))

    assert y.shape == (N, C, H, W) and y.dtype == jnp.float32
    err = jnp.abs(y - y_ref)
    tol = 5e-2 + 2e-2 * jnp.abs(y_ref)   # bf16 MXU operands, f32 accumulation/residual
    assert bool(jnp.all(err <= tol)), f"mismatch vs reference: max abs err {float(err.max())}"

    print("KERNEL_OK")
</pallas_src>

<mosaic_0001>
module attributes {stable_mosaic.version = 11 : i64} {
  func.func @_basic_block_kernel(%arg0: i32, %arg1: memref<1x8x384xf32, #tpu.memory_space<vmem>>, %arg2: memref<8x72xbf16, #tpu.memory_space<vmem>>, %arg3: memref<8x72xbf16, #tpu.memory_space<vmem>>, %arg4: memref<8x1xf32, #tpu.memory_space<vmem>>, %arg5: memref<8x1xf32, #tpu.memory_space<vmem>>, %arg6: memref<1x384xf32, #tpu.memory_space<vmem>>, %arg7: memref<1x8x384xf32, #tpu.memory_space<vmem>>) attributes {dimension_semantics = [#tpu.dimension_semantics<parallel>], iteration_bounds = array<i64: 2>, scalar_prefetch = 0 : i64, scratch_operands = 0 : i64, tpu.core_type = #tpu.core_type<tc>, window_params = [{transform_indices = @transform_0, window_bounds = array<i64: 1, 8, 384>}, {pipeline_mode = #tpu.pipeline_mode<synchronous>, transform_indices = @transform_1, window_bounds = array<i64: 8, 72>}, {pipeline_mode = #tpu.pipeline_mode<synchronous>, transform_indices = @transform_2, window_bounds = array<i64: 8, 72>}, {pipeline_mode = #tpu.pipeline_mode<synchronous>, transform_indices = @transform_3, window_bounds = array<i64: 8, 1>}, {pipeline_mode = #tpu.pipeline_mode<synchronous>, transform_indices = @transform_4, window_bounds = array<i64: 8, 1>}, {pipeline_mode = #tpu.pipeline_mode<synchronous>, transform_indices = @transform_5, window_bounds = array<i64: 1, 384>}, {transform_indices = @transform_6, window_bounds = array<i64: 1, 8, 384>}]} {
    %c0 = arith.constant 0 : index
    %c0_0 = arith.constant 0 : index
    %c0_1 = arith.constant 0 : index
    %0 = vector.load %arg1[%c0, %c0_0, %c0_1] : memref<1x8x384xf32, #tpu.memory_space<vmem>>, vector<1x8x384xf32>
    %1 = vector.shape_cast %0 : vector<1x8x384xf32> to vector<8x384xf32>
    %c19_i32 = arith.constant 19 : i32
    %2 = tpu.dynamic_rotate %1 by %c19_i32 dim 1 : vector<8x384xf32>, i32 -> vector<8x384xf32>
    %c18_i32 = arith.constant 18 : i32
    %3 = tpu.dynamic_rotate %1 by %c18_i32 dim 1 : vector<8x384xf32>, i32 -> vector<8x384xf32>
    %c17_i32 = arith.constant 17 : i32
    %4 = tpu.dynamic_rotate %1 by %c17_i32 dim 1 : vector<8x384xf32>, i32 -> vector<8x384xf32>
    %c1_i32 = arith.constant 1 : i32
    %5 = tpu.dynamic_rotate %1 by %c1_i32 dim 1 : vector<8x384xf32>, i32 -> vector<8x384xf32>
    %c383_i32 = arith.constant 383 : i32
    %6 = tpu.dynamic_rotate %1 by %c383_i32 dim 1 : vector<8x384xf32>, i32 -> vector<8x384xf32>
    %c367_i32 = arith.constant 367 : i32
    %7 = tpu.dynamic_rotate %1 by %c367_i32 dim 1 : vector<8x384xf32>, i32 -> vector<8x384xf32>
    %c366_i32 = arith.constant 366 : i32
    %8 = tpu.dynamic_rotate %1 by %c366_i32 dim 1 : vector<8x384xf32>, i32 -> vector<8x384xf32>
    %c365_i32 = arith.constant 365 : i32
    %9 = tpu.dynamic_rotate %1 by %c365_i32 dim 1 : vector<8x384xf32>, i32 -> vector<8x384xf32>
    %10 = tpu.concatenate %2, %3, %4, %5, %1, %6, %7, %8, %9 in 0 : vector<8x384xf32>, vector<8x384xf32>, vector<8x384xf32>, vector<8x384xf32>, vector<8x384xf32>, vector<8x384xf32>, vector<8x384xf32>, vector<8x384xf32>, vector<8x384xf32> -> vector<72x384xf32>
    %11 = arith.truncf %10 : vector<72x384xf32> to vector<72x384xbf16>
    %c0_2 = arith.constant 0 : index
    %c0_3 = arith.constant 0 : index
    %12 = vector.load %arg2[%c0_2, %c0_3] : memref<8x72xbf16, #tpu.memory_space<vmem>>, vector<8x72xbf16>
    %cst = arith.constant dense<0.000000e+00> : vector<8x384xf32>
    %13 = tpu.matmul %12, %11, %cst {dimension_numbers = #tpu.dot_dimension_numbers<[1], [0], [0], [1], [0, 0, 1, 1], [], []>} : vector<8x72xbf16>, vector<72x384xbf16>, vector<8x384xf32> -> vector<8x384xf32>
    %c0_4 = arith.constant 0 : index
    %c0_5 = arith.constant 0 : index
    %14 = vector.load %arg4[%c0_4, %c0_5] : memref<8x1xf32, #tpu.memory_space<vmem>>, vector<8x1xf32>
    %15 = vector.broadcast %14 : vector<8x1xf32> to vector<8x384xf32>
    %16 = arith.addf %13, %15 : vector<8x384xf32>
    %cst_6 = arith.constant 0.000000e+00 : f32
    %17 = vector.broadcast %cst_6 : f32 to vector<8x384xf32>
    %18 = arith.maximumf %16, %17 : vector<8x384xf32>
    %c0_7 = arith.constant 0 : index
    %c0_8 = arith.constant 0 : index
    %19 = vector.load %arg6[%c0_7, %c0_8] : memref<1x384xf32, #tpu.memory_space<vmem>>, vector<1x384xf32>
    %20 = vector.broadcast %19 : vector<1x384xf32> to vector<8x384xf32>
    %21 = arith.mulf %18, %20 : vector<8x384xf32>
    %c19_i32_9 = arith.constant 19 : i32
    %22 = tpu.dynamic_rotate %21 by %c19_i32_9 dim 1 : vector<8x384xf32>, i32 -> vector<8x384xf32>
    %c18_i32_10 = arith.constant 18 : i32
    %23 = tpu.dynamic_rotate %21 by %c18_i32_10 dim 1 : vector<8x384xf32>, i32 -> vector<8x384xf32>
    %c17_i32_11 = arith.constant 17 : i32
    %24 = tpu.dynamic_rotate %21 by %c17_i32_11 dim 1 : vector<8x384xf32>, i32 -> vector<8x384xf32>
    %c1_i32_12 = arith.constant 1 : i32
    %25 = tpu.dynamic_rotate %21 by %c1_i32_12 dim 1 : vector<8x384xf32>, i32 -> vector<8x384xf32>
    %c383_i32_13 = arith.constant 383 : i32
    %26 = tpu.dynamic_rotate %21 by %c383_i32_13 dim 1 : vector<8x384xf32>, i32 -> vector<8x384xf32>
    %c367_i32_14 = arith.constant 367 : i32
    %27 = tpu.dynamic_rotate %21 by %c367_i32_14 dim 1 : vector<8x384xf32>, i32 -> vector<8x384xf32>
    %c366_i32_15 = arith.constant 366 : i32
    %28 = tpu.dynamic_rotate %21 by %c366_i32_15 dim 1 : vector<8x384xf32>, i32 -> vector<8x384xf32>
    %c365_i32_16 = arith.constant 365 : i32
    %29 = tpu.dynamic_rotate %21 by %c365_i32_16 dim 1 : vector<8x384xf32>, i32 -> vector<8x384xf32>
    %30 = tpu.concatenate %22, %23, %24, %25, %21, %26, %27, %28, %29 in 0 : vector<8x384xf32>, vector<8x384xf32>, vector<8x384xf32>, vector<8x384xf32>, vector<8x384xf32>, vector<8x384xf32>, vector<8x384xf32>, vector<8x384xf32>, vector<8x384xf32> -> vector<72x384xf32>
    %31 = arith.truncf %30 : vector<72x384xf32> to vector<72x384xbf16>
    %c0_17 = arith.constant 0 : index
    %c0_18 = arith.constant 0 : index
    %32 = vector.load %arg3[%c0_17, %c0_18] : memref<8x72xbf16, #tpu.memory_space<vmem>>, vector<8x72xbf16>
    %cst_19 = arith.constant dense<0.000000e+00> : vector<8x384xf32>
    %33 = tpu.matmul %32, %31, %cst_19 {dimension_numbers = #tpu.dot_dimension_numbers<[1], [0], [0], [1], [0, 0, 1, 1], [], []>} : vector<8x72xbf16>, vector<72x384xbf16>, vector<8x384xf32> -> vector<8x384xf32>
    %c0_20 = arith.constant 0 : index
    %c0_21 = arith.constant 0 : index
    %34 = vector.load %arg5[%c0_20, %c0_21] : memref<8x1xf32, #tpu.memory_space<vmem>>, vector<8x1xf32>
    %35 = vector.broadcast %34 : vector<8x1xf32> to vector<8x384xf32>
    %36 = arith.addf %33, %35 : vector<8x384xf32>
    %37 = arith.addf %36, %1 : vector<8x384xf32>
    %cst_22 = arith.constant 0.000000e+00 : f32
    %38 = vector.broadcast %cst_22 : f32 to vector<8x384xf32>
    %39 = arith.maximumf %37, %38 : vector<8x384xf32>
    %c0_23 = arith.constant 0 : index
    %c0_24 = arith.constant 0 : index
    %c0_25 = arith.constant 0 : index
    %40 = vector.load %arg7[%c0_23, %c0_24, %c0_25] : memref<1x8x384xf32, #tpu.memory_space<vmem>>, vector<1x8x384xf32>
    %41 = vector.shape_cast %40 : vector<1x8x384xf32> to vector<8x384xf32>
    %42 = vector.shape_cast %39 : vector<8x384xf32> to vector<1x8x384xf32>
    tpu.vector_store %arg7[%c0_23, %c0_24, %c0_25], %42 {strides = array<i32>} : memref<1x8x384xf32, #tpu.memory_space<vmem>>, vector<1x8x384xf32>,
    return
  }
  func.func @transform_0(%arg0: i32) -> (i32, i32, i32) {
    %c0_i32 = arith.constant 0 : i32
    %c0_i32_0 = arith.constant 0 : i32
    %c0_i32_1 = arith.constant 0 : i32
    return %arg0, %c0_i32, %c0_i32_0 : i32, i32, i32
  }
  func.func @transform_1(%arg0: i32) -> (i32, i32) {
    %c0_i32 = arith.constant 0 : i32
    %c0_i32_0 = arith.constant 0 : i32
    %c0_i32_1 = arith.constant 0 : i32
    return %c0_i32, %c0_i32_0 : i32, i32
  }
  func.func @transform_2(%arg0: i32) -> (i32, i32) {
    %c0_i32 = arith.constant 0 : i32
    %c0_i32_0 = arith.constant 0 : i32
    %c0_i32_1 = arith.constant 0 : i32
    return %c0_i32, %c0_i32_0 : i32, i32
  }
  func.func @transform_3(%arg0: i32) -> (i32, i32) {
    %c0_i32 = arith.constant 0 : i32
    %c0_i32_0 = arith.constant 0 : i32
    %c0_i32_1 = arith.constant 0 : i32
    return %c0_i32, %c0_i32_0 : i32, i32
  }
  func.func @transform_4(%arg0: i32) -> (i32, i32) {
    %c0_i32 = arith.constant 0 : i32
    %c0_i32_0 = arith.constant 0 : i32
    %c0_i32_1 = arith.constant 0 : i32
    return %c0_i32, %c0_i32_0 : i32, i32
  }
  func.func @transform_5(%arg0: i32) -> (i32, i32) {
    %c0_i32 = arith.constant 0 : i32
    %c0_i32_0 = arith.constant 0 : i32
    %c0_i32_1 = arith.constant 0 : i32
    return %c0_i32, %c0_i32_0 : i32, i32
  }
  func.func @transform_6(%arg0: i32) -> (i32, i32, i32) {
    %c0_i32 = arith.constant 0 : i32
    %c0_i32_0 = arith.constant 0 : i32
    %c0_i32_1 = arith.constant 0 : i32
    return %arg0, %c0_i32, %c0_i32_0 : i32, i32, i32
  }
}

</mosaic_0001>

<bundles_post_ra>
// kernel: tpu_custom_call.1
= control target key start
LH: loop header
LB: loop body
LE: loop exit
PB: predicated region body
PF: predicated region fallthrough
CT: control target
= control target key end

     0   :  { %11 = vsyncpa [#allocation3], 0  ;;  %s1507_s0 = inlined_call_operand.hbm [shape: f32[2,8,384], index: 0, kind: input, shape index: {}]   ;;  %s1508_s1 = inlined_call_operand.vmem [shape: bf16[8,72], index: 1, kind: input, shape index: {}]   ;;  %s1509_s2 = inlined_call_operand.vmem [shape: bf16[8,72], index: 2, kind: input, shape index: {}]   ;;  %s1510_s3 = inlined_call_operand.vmem [shape: f32[8,1], index: 3, kind: input, shape index: {}]   ;;  %s1511_s4 = inlined_call_operand.vmem [shape: f32[8,1], index: 4, kind: input, shape index: {}]   ;;  %s1512_s5 = inlined_call_operand.vmem [shape: f32[1,384], index: 5, kind: input, shape index: {}]   ;;  %s1513_s6 = inlined_call_operand.hbm [shape: f32[2,8,384], index: 6, kind: output, shape index: {}]  }
   0x1   :  { %13 = vsyncpa [#allocation3 + $0x1], 0 }
   0x2   :  { %14 = vsyncpa [#allocation4], 0 }
   0x3   :  { %16 = vsyncpa [#allocation4 + $0x1], 0  ;;  %s1117_s21 = smov 0   ;;  %s1119_s22 = smov 0  }
   0x4   :  { %s1121_s23 = smov 0   ;;  %s1123_s24 = smov 0  }
   0x5 LB: > { %s1138_s25 = sadd.s32 4294967295, %s1067_s24   ;;  %s775_s26 = sadd.s32 4294967294, %s1067_s24   ;;  %s1067_s24 = sphi %s1123_s24, %s1527_s24   ;;  %s1063_s23 = sphi %s1121_s23, %s1526_s23   ;;  %s1059_s22 = sphi %s1119_s22, %s1525_s22   ;;  %s1055_s21 = sphi %s1117_s21, %s1524_s21  }
   0x6   : > { %s1142_s27 = sadd.s32 1, %s1067_s24   ;;  %s29_s28 = sadd.s32 1, %s1063_s23 }
   0x7   : > { %s26_s29 = ssub.s32 %s1067_s24, %s1142_s27  ;;  %p36_p0 = scmp.ne.s32.totalorder %s1063_s23, %s1059_s22 }
   0x8   : > { %p27_p1 = scmp.eq.s32.totalorder %s26_s29, 0  ;;  %p37_p2 = scmp.eq.s32.totalorder %s1067_s24, 0 }
   0x9   : > { %p42_p3 = scmp.ne.s32.totalorder %s1059_s22, %s1055_s21  ;;  %p43_p4 = scmp.eq.s32.totalorder %s1138_s25, 0 }
   0xa   : > { %s1154_s30 = scalar_select %p27_p1, %s1063_s23, %s29_s28  }
   0xb   : > { %p38_p5 = por %p37_p2, %p36_p0  ;;  %p1156_p6 = por %p43_p4, %p42_p3 }
   0xc   : > { %p171_p7 = scmp.eq.s32.totalorder %s1138_s25, 1  ;;  %p177_p8 = scmp.eq.s32.totalorder %s775_s26, 1 }
   0xd   : > { %p845_p10 = scmp.lt.s32.totalorder %s1067_s24, 2  ;;  %s212_s10 = sand.u32 1, %s1063_s23  }
   0xe   : > { %p1163_p11 = por %p171_p7, %p36_p0  ;;  %p1167_p12 = por %p177_p8, %p42_p3 }
   0xf   : > { %s830_s11 = smul.u32 384, %s1067_s24  ;;  %p1178_p13 = pnand %p845_p10, %p38_p5 }
  0x10   : > { %s1516_s8 = scalar_select %p1163_p11, 1, 0 }
  0x11   : > { %s1517_s9 = scalar_select %p1167_p12, 1, 0 }
  0x12   : > { %s829_s12 = smul.u32 24, %s212_s10  ;;  %s1176_s15 = scalar_lea.hbm %s1507_s0, %s830_s11 }
  0x13   : > { %s213_s19 = scalar_lea.sflag [#allocation3], %s212_s10  ;;  %s971_s20 = scalar_lea.hbm %s1176_s15, 384 }
  0x14   : > { %s216_s17 = scalar_lea.vmem [#allocation2], %s829_s12  ;;  %p972_p2 = scmp.ne.s32.totalorder %s1176_s15, %s971_s20 }
  0x15   : > { %s224_s18 = sshll.u32 %s216_s17, 4  ;;  %p973_p3 = pneg %p1178_p13  ;;  %s1183_s18 = int_to_ptr.vmem [resolvable:$true] %s224_s18 }
  0x16   : > { %s976_s29 = scalar_lea.hbm %s1507_s0, 768  ;;  %p977_p7 = scmp.lt.u32.totalorder %s1176_s15, %s1507_s0 }
  0x17   : > { %p974_p4 = pnand %p973_p3, %p972_p2  ;;  %p978_p8 = scmp.lt.u32.totalorder %s976_s29, %s971_s20 }
  0x18   : > { %p980_p9 = scmp.lt.u32.totalorder %s971_s20, %s1176_s15 }
  0x19   : > { %p975_p5 = pneg %p974_p4  ;;  %p979_p10 = por %p978_p8, %p977_p7 }
  0x1b   : > { %p981_p0 = por %p980_p9, %p979_p10 }
  0x1d   : > { %p982_p1 = pnand %p981_p0, %p975_p5 }
  0x1f   : > { %985 = shalt.err (!%p982_p1)
}
  0x20   : > { %s986_s10 = scalar_lea.vmem %s1183_s18, 384  ;;  %s1069_s12 = smov [#allocation2]  }
  0x21   : > { %p987_p2 = scmp.ne.s32.totalorder %s1183_s18, %s986_s10  ;;  %s991_s14 = sshll.u32 %s1069_s12, 4  ;;  %s992_s14 = int_to_ptr.vmem [resolvable:$false] %s991_s14 }
  0x22   : > { %s993_s17 = scalar_lea.vmem %s992_s14, 768  ;;  %p994_p11 = scmp.lt.s32.totalorder %s1183_s18, %s992_s14 }
  0x23   : > { %p989_p4 = pnand %p987_p2, %p973_p3  ;;  %p995_p7 = scmp.lt.s32.totalorder %s993_s17, %s986_s10 }
  0x25   : > { %p990_p12 = pneg %p989_p4  ;;  %p996_p8 = por %p995_p7, %p994_p11 }
  0x27   : > { %p997_p9 = pnand %p996_p8, %p990_p12 }
  0x29   : > { %1000 = shalt.err (!%p997_p9)
}
  0x2a   : > { %840 = dma.hbm_to_vmem [thread:$0]  (!%p1178_p13), %s1176_s15, 384, %s1183_s18, %s213_s19  }
  0x2b   : > { %p1519_p0 = scmp.lt.s32.totalorder %s1067_s24, 3  ;;  %p1520_p1 = scmp.ge.s32.totalorder %s1067_s24, 1 }
  0x2d   : > { %p230_p3 = pnand %p1520_p1, %p1519_p0 }
  0x2e   : > { %s1216_s20 = sand.u32 (!%p230_p3), 1, %s1059_s22  }
  0x2f   : > { %233 = sbr.rel (%p230_p3) target bundleno = 818 (0x332), region = 44  ;;  %s236_s28 = scalar_lea.sflag (!%p230_p3), [#allocation3], %s1216_s20 }
  0x30   : > { %s831_s26 = smul.u32 (!%p230_p3), 24, %s1216_s20 }
  0x32   : > { %s239_s16 = scalar_lea.vmem (!%p230_p3), [#allocation2], %s831_s26 }
  0x36   : > { %1046 = dma.done.wait (%p1156_p6), %s236_s28, 384  }
  0x37   : > { %1048 = vsyncadd (%p1156_p6), %s236_s28, 4294966912  ;;  %v1070_v0 = vmov 0.0   ;;  %v1227_v1 = vld [vmem:[%s239_s16 + $0x10] sm:$0xff]  ;;  %v1229_v2 = vld [vmem:[%s239_s16] sm:$0xff]  ;;  %s1071_s15 = smov 19   ;;  %s1072_s7 = smov 18   ;;  %v278_v8 = vlaneseq }
  0x38   : > { %801 = vmatprep.subr.bf16.mxu1 %v1070_v0  ;;  %v1231_v3 = vld [vmem:[%s239_s16 + $0x8] sm:$0xff]  ;;  %276 = vrot.lane.b32.xlu1 %v1227_v1, %s1071_s15  ;;  %s1073_s18 = smov 1   ;;  %s1074_s19 = smov 17   ;;  %v1078_v6 = vmov 0   ;;  %vm1079_vm0 = vmmov 0   ;;  %vm380_vm9 = vcmask 1043456  }
  0x39   : > { %v890_v4 = vpack.i.bf16 %v1231_v3, %v1229_v2  ;;  %v910_v5 = vpack.i.bf16 %v1227_v1, %v1231_v3  ;;  %s1075_s29 = smov 127   ;;  %s1076_s11 = smov 110   ;;  %422 = vmatprep.mubr.bf16.mxu0 %v1078_v6  ;;  %811 = vmatprep.mubr.msk.bf16.mxu1 %vm1079_vm0, %v1070_v0  ;;  %v370_v7 = vld [vmem:[%s1510_s3] sm:$0xff]  ;;  %v1269_v10 = vand.u32 127, %v278_v8  ;;  %vm376_vm10 = vcmask 588800  }
  0x3a   : > { %s1077_s13 = smov 111   ;;  %930 = vset.pattern.permute.xlu0 %v1078_v6  ;;  %s1080_s10 = smov 109  }
  0x3b   : > { %891 = vrot.lane.b32.xlu0 %v890_v4, %s1071_s15  ;;  %vm280_vm1 = vcmp.lt.s32.totalorder %v1269_v10, 19  ;;  %vm290_vm2 = vcmp.lt.s32.totalorder %v1269_v10, 18  ;;  %vm310_vm3 = vcmp.lt.s32.totalorder %v1269_v10, 1  ;;  %vm300_vm4 = vcmp.lt.s32.totalorder %v1269_v10, 17  ;;  %p1521_p11 = scmp.ne.s32.totalorder %s1516_s8, 0  ;;  %s1081_s28 = smov [#allocation5]  }
  0x3c   : > { %288 = vrot.lane.b32.xlu1 %v1227_v1, %s1072_s7  ;;  %vm320_vm5 = vcmp.lt.s32.totalorder %v1269_v10, 127  ;;  %vm340_vm6 = vcmp.lt.s32.totalorder %v1269_v10, 110  ;;  %vm330_vm7 = vcmp.lt.s32.totalorder %v1269_v10, 111  ;;  %vm350_vm8 = vcmp.lt.s32.totalorder %v1269_v10, 109  ;;  %s1005_s16 = sshll.u32 %s1081_s28, 4  ;;  %s1006_s16 = int_to_ptr.vmem [resolvable:$false] %s1005_s16 }
  0x3d   : > { %s1007_s12 = scalar_lea.vmem %s1006_s16, 768 }
  0x3f   : > { %896 = vrot.lane.b32.xlu0 %v890_v4, %s1072_s7 }
  0x40   : > { %906 = vrot.lane.b32.xlu1 %v890_v4, %s1073_s18 }
  0x43   : > { %901 = vrot.lane.b32.xlu0 %v890_v4, %s1074_s19 }
  0x44   : > { %308 = vrot.lane.b32.xlu1 %v1227_v1, %s1073_s18 }
  0x47   : > { %298 = vrot.lane.b32.xlu0 %v1227_v1, %s1074_s19 }
  0x48   : > { %314 = vrot.lane.b32.xlu1 %v1229_v2, %s1075_s29 }
  0x4b   : > { %911 = vrot.lane.b32.xlu0 %v910_v5, %s1075_s29 }
  0x4c   : > { %921 = vrot.lane.b32.xlu1 %v910_v5, %s1076_s11 }
  0x4f   : > { %916 = vrot.lane.b32.xlu0 %v910_v5, %s1077_s13 }
  0x50   : > { %334 = vrot.lane.b32.xlu1 %v1229_v2, %s1076_s11 }
  0x53   : > { %324 = vrot.lane.b32.xlu0 %v1229_v2, %s1077_s13 }
  0x54   : > { %348 = vrot.lane.b32.xlu1 %v1227_v1, %s1080_s10 }
  0x57   : > { %926 = vrot.lane.b32.xlu0 %v890_v4, %s1080_s10 }
  0x5b   : > { %373 = vperm.xlu0 %930, %v370_v7  }
  0xaa   : > { %v277_v9 = vpop.permute.xlu1 %276 }
  0xad   : > { %v892_v11 = vpop.permute.xlu0 %891 }
  0xae   : > { %v894_v12 = vunpack.i.h.bf16 %v892_v11  ;;  %v893_v13 = vunpack.i.l.bf16 %v892_v11  ;;  %v289_v14 = vpop.permute.xlu1 %288 }
  0xb0   : > { %v282_v19 = vsel %vm280_vm1, %v893_v13, %v894_v12  ;;  %v281_v20 = vsel %vm280_vm1, %v894_v12, %v277_v9  ;;  %v283_v28 = vsel %vm280_vm1, %v277_v9, %v893_v13 }
  0xb1   : > { %v897_v15 = vpop.permute.xlu0 %896 }
  0xb2   : > { %v899_v16 = vunpack.i.h.bf16 %v897_v15  ;;  %v898_v17 = vunpack.i.l.bf16 %v897_v15  ;;  %v907_v18 = vpop.permute.xlu1 %906 }
  0xb3   : > { %v909_v21 = vunpack.i.h.bf16 %v907_v18  ;;  %v908_v22 = vunpack.i.l.bf16 %v907_v18 }
  0xb4   : > { %v292_v23 = vsel %vm290_vm2, %v898_v17, %v899_v16  ;;  %v291_v24 = vsel %vm290_vm2, %v899_v16, %v289_v14  ;;  %v293_v29 = vsel %vm290_vm2, %v289_v14, %v898_v17 }
  0xb5   : > { %v902_v25 = vpop.permute.xlu0 %901  ;;  %v355_v26 = vpack.c.bf16 %v292_v23, %v282_v19  ;;  %v356_v27 = vpack.c.bf16 %v291_v24, %v281_v20  ;;  %v354_v32 = vpack.c.bf16 %v293_v29, %v283_v28  ;;  %v312_v33 = vsel %vm310_vm3, %v908_v22, %v909_v21 }
  0xb6   : > { %v904_v30 = vunpack.i.h.bf16 %v902_v25  ;;  %v903_v31 = vunpack.i.l.bf16 %v902_v25  ;;  %v309_v34 = vpop.permute.xlu1 %308 }
  0xb7   : > { %390 = vmatprep.subr.bf16.mxu0 %v355_v26  ;;  %802 = vmatpush3.bf16.msra.mxu1 %v356_v27  ;;  %v311_v35 = vsel %vm310_vm3, %v909_v21, %v309_v34  ;;  %v313_v36 = vsel %vm310_vm3, %v309_v34, %v908_v22  ;;  %v369_v26 = vld [vmem:[%s1508_s1] sm:$0xf]  ;;  %v477_v27 = vshrl.u32 %v278_v8, 7 }
  0xb8   : > { %391 = vmatpush1.bf16.msra.mxu0 %v354_v32  ;;  %v302_v37 = vsel %vm300_vm4, %v903_v31, %v904_v30  ;;  %803 = vmatprep.subr.bf16.mxu1 %v1070_v0 }
  0xb9   : > { %v299_v38 = vpop.permute.xlu0 %298  ;;  %v358_v39 = vpack.c.bf16 %v312_v33, %v302_v37  ;;  %v486_v28 = vsub.s32 2, %v477_v27 }
  0xba   : > { %v301_v40 = vsel %vm300_vm4, %v904_v30, %v299_v38  ;;  %v303_v41 = vsel %vm300_vm4, %v299_v38, %v903_v31  ;;  %v315_v44 = vpop.permute.xlu1 %314  ;;  %v474_v30 = vld [vmem:[%s1512_s5] sm:$0x7] }
  0xbb   : > { %v357_v42 = vpack.c.bf16 %v313_v36, %v303_v41  ;;  %v359_v43 = vpack.c.bf16 %v311_v35, %v301_v40  ;;  %392 = vmatprep.subr.bf16.mxu0 %v358_v39  ;;  %v487_v34 = vrot.slane %v474_v30, %v486_v28 }
  0xbd   : > { %v912_v45 = vpop.permute.xlu0 %911  ;;  %393 = vmatpush1.bf16.msra.mxu0 %v357_v42  ;;  %804 = vmatpush3.bf16.msra.mxu1 %v359_v43 }
  0xbe   : > { %v914_v46 = vunpack.i.h.bf16 %v912_v45  ;;  %v913_v47 = vunpack.i.l.bf16 %v912_v45  ;;  %805 = vmatprep.subr.bf16.mxu1 %v1070_v0  ;;  %v922_v48 = vpop.permute.xlu1 %921 }
  0xbf   : > { %v924_v49 = vunpack.i.h.bf16 %v922_v48  ;;  %v923_v50 = vunpack.i.l.bf16 %v922_v48 }
  0xc0   : > { %v321_v51 = vsel %vm320_vm5, %v913_v47, %v914_v46  ;;  %v323_v52 = vsel %vm320_vm5, %v914_v46, %v315_v44  ;;  %v322_v56 = vsel %vm320_vm5, %v315_v44, %v913_v47  ;;  %v482_v44 = vsub.s32 1, %v477_v27 }
  0xc1   : > { %v917_v53 = vpop.permute.xlu0 %916  ;;  %v361_v54 = vpack.c.bf16 %v321_v51, %v1231_v3  ;;  %v362_v55 = vpack.c.bf16 %v323_v52, %v1227_v1  ;;  %v360_v59 = vpack.c.bf16 %v322_v56, %v1229_v2  ;;  %v341_v60 = vsel %vm340_vm6, %v923_v50, %v924_v49 }
  0xc2   : > { %v919_v57 = vunpack.i.h.bf16 %v917_v53  ;;  %v918_v58 = vunpack.i.l.bf16 %v917_v53  ;;  %v335_v61 = vpop.permute.xlu1 %334  ;;  %v483_v48 = vrot.slane %v474_v30, %v482_v44  ;;  %v582_v53 = vld [vmem:[%s1511_s4] sm:$0xff] }
  0xc3   : > { %394 = vmatprep.subr.bf16.mxu0 %v361_v54  ;;  %806 = vmatpush3.bf16.msra.mxu1 %v362_v55  ;;  %v342_v62 = vsel %vm340_vm6, %v335_v61, %v923_v50  ;;  %v343_v63 = vsel %vm340_vm6, %v924_v49, %v335_v61 }
  0xc4   : > { %395 = vmatpush1.bf16.msra.mxu0 %v360_v59  ;;  %v331_v4 = vsel %vm330_vm7, %v918_v58, %v919_v57  ;;  %807 = vmatprep.subr.bf16.mxu1 %v1070_v0 }
  0xc5   : > { %v325_v5 = vpop.permute.xlu0 %324  ;;  %v364_v7 = vpack.c.bf16 %v341_v60, %v331_v4 }
  0xc6   : > { %v332_v9 = vsel %vm330_vm7, %v325_v5, %v918_v58  ;;  %v333_v11 = vsel %vm330_vm7, %v919_v57, %v325_v5  ;;  %v349_v15 = vpop.permute.xlu1 %348 }
  0xc7   : > { %v363_v12 = vpack.c.bf16 %v342_v62, %v332_v9  ;;  %v365_v13 = vpack.c.bf16 %v343_v63, %v333_v11  ;;  %396 = vmatprep.subr.bf16.mxu0 %v364_v7 }
  0xc9   : > { %v927_v14 = vpop.permute.xlu0 %926  ;;  %397 = vmatpush1.bf16.msra.mxu0 %v363_v12  ;;  %808 = vmatpush3.bf16.msra.mxu1 %v365_v13 }
  0xca   : > { %v929_v16 = vunpack.i.h.bf16 %v927_v14  ;;  %v928_v17 = vunpack.i.l.bf16 %v927_v14  ;;  %809 = vmatprep.subr.bf16.mxu1 %v1070_v0 }
  0xcc   : > { %v351_v18 = vsel %vm350_vm8, %v929_v16, %v349_v15  ;;  %v353_v19 = vsel %vm350_vm8, %v349_v15, %v928_v17  ;;  %v352_v20 = vsel %vm350_vm8, %v928_v17, %v929_v16 }
  0xcd   : > { %v367_v21 = vpack.c.bf16 %v351_v18, %v351_v18  ;;  %v368_v22 = vpack.c.bf16 %v353_v19, %v353_v19  ;;  %v366_v23 = vpack.c.bf16 %v352_v20, %v352_v20 }
  0xcf   : > { %780 = vmatprep.subr.msk.bf16.mxu0 %vm380_vm9, %v367_v21  ;;  %v382_v24 = vsel %vm380_vm9, %v366_v23, 0  ;;  %v388_v25 = vsel %vm380_vm9, %v368_v22, 0 }
  0xd0   : > { %399 = vmatpush1.bf16.msra.mxu0 %v382_v24  ;;  %810 = vmatpush3.bf16.msra.mxu1 %v388_v25 }
  0xd1   : > { %815 = vmatprep.subr.bf16.mxu1 %v1070_v0 }
  0xd3   : > { %781 = vmatmul.mubr.msk.bf16.vlgmr.msra.gmra.mrb[0].mxu0 %vm376_vm10, %v369_v26  ;;  %812 = vmatmul.mubr.msk.bf16.vlgmr.msra.gmra.mrb[0].mxu1 %vm376_vm10, %v369_v26 }
  0xd4   : > { %825 = vmatprep.mubr.msk.bf16.mxu1 %vm1079_vm0, %v1070_v0  ;;  %632 = vmatprep.mubr.bf16.mxu0 %v1078_v6  ;;  %v478_v6 = vsub.s32 0, %v477_v27 }
  0xd6   : > { %v479_v46 = vrot.slane %v474_v30, %v478_v6 }
  0xda   : > { %v374_v29 = vpop.permute.xlu0 %373 }
 0x1a6   : > { %v424_v31 = vpop.f32.mrb[0].mxu0  ;;  %v465_v32 = vpop.f32.mrb[0].mxu1 }
 0x1a7   : > { %v466_v33 = vadd.f32 %v465_v32, %v374_v29  ;;  %v426_v35 = vpop.f32.mrb[1].mxu0  ;;  %v813_v36 = vpop.f32.mrb[1].mxu1  ;;  %v425_v42 = vadd.f32 %v424_v31, %v374_v29 }
 0x1a8   : > { %v468_v37 = vpop.f32.mrb[2].mxu1  ;;  %v428_v38 = vpop.f32.mrb[2].mxu0  ;;  %v427_v43 = vadd.f32 %v426_v35, %v374_v29 }
 0x1a9   : > { %v473_v39 = vmax.f32 %v466_v33, 0.0  ;;  %v814_v40 = vpop.f32.mrb[3].mxu1  ;;  %v429_v41 = vpop.f32.mrb[3].mxu0  ;;  %v471_v45 = vmax.f32 %v425_v42, 0.0 }
 0x1aa   : > { %v472_v47 = vmax.f32 %v427_v43, 0.0 }
 0x1ab   : > { %v1350_v8 = vmul.f32 %v487_v34, %v473_v39  ;;  %v1360_v49 = vmul.f32 %v479_v46, %v471_v45 }
 0x1ac   : > { %v1362_v50 = vmul.f32 %v483_v48, %v472_v47 }
 0x1ad   : > { %507 = vrot.lane.b32.xlu1 %v1350_v8, %s1072_s7  ;;  %498 = vrot.lane.b32.xlu0 %v1350_v8, %s1071_s15 }
 0x1ae   : > { %v941_v51 = vpack.i.bf16 %v1362_v50, %v1360_v49  ;;  %v951_v52 = vpack.i.bf16 %v1350_v8, %v1362_v50 }
 0x1b1   : > { %525 = vrot.lane.b32.xlu1 %v1350_v8, %s1073_s18  ;;  %516 = vrot.lane.b32.xlu0 %v1350_v8, %s1074_s19 }
 0x1b5   : > { %539 = vrot.lane.b32.xlu0 %v1360_v49, %s1077_s13  ;;  %530 = vrot.lane.b32.xlu1 %v1360_v49, %s1075_s29 }
 0x1b9   : > { %942 = vrot.lane.b32.xlu0 %v941_v51, %s1074_s19  ;;  %932 = vrot.lane.b32.xlu1 %v941_v51, %s1071_s15 }
 0x1bd   : > { %952 = vrot.lane.b32.xlu0 %v951_v52, %s1075_s29  ;;  %937 = vrot.lane.b32.xlu1 %v941_v51, %s1072_s7  ;;  %s832_s29 = smul.u32 384, %s1138_s25  ;;  %s691_s25 = scalar_lea.sflag [#allocation4], %s1216_s20 }
 0x1bf   : > { %s1463_s17 = scalar_lea.hbm %s1513_s6, %s832_s29 }
 0x1c1   : > { %957 = vrot.lane.b32.xlu0 %v951_v52, %s1077_s13  ;;  %947 = vrot.lane.b32.xlu1 %v941_v51, %s1073_s18  ;;  %s267_s18 = scalar_lea.vmem [#allocation5], %s831_s26 }
 0x1c5   : > { %967 = vrot.lane.b32.xlu0 %v941_v51, %s1080_s10  ;;  %548 = vrot.lane.b32.xlu1 %v1360_v49, %s1076_s11 }
 0x1c9   : > { %585 = vperm.xlu0 %930, %v582_v53   ;;  %962 = vrot.lane.b32.xlu1 %v951_v52, %s1076_s11  ;;  %s705_s11 = sshll.u32 %s267_s18, 4  ;;  %s1465_s11 = int_to_ptr.vmem [resolvable:$true] %s705_s11 }
 0x1ca   : > { %s1001_s26 = scalar_lea.vmem %s1465_s11, 384  ;;  %p1008_p5 = scmp.lt.s32.totalorder %s1465_s11, %s1006_s16 }
 0x1cb   : > { %p1002_p6 = scmp.ne.s32.totalorder %s1465_s11, %s1001_s26  ;;  %p1009_p10 = scmp.lt.s32.totalorder %s1007_s12, %s1001_s26 }
 0x1cd   : > { %561 = vrot.lane.b32.xlu1 %v1350_v8, %s1080_s10  ;;  %p1003_p12 = pnand %p1002_p6, %p1521_p11  ;;  %p1010_p2 = por %p1009_p10, %p1008_p5 }
 0x1cf   : > { %p1004_p13 = pneg %p1003_p12 }
 0x1d1   : > { %p1011_p4 = pnand %p1010_p2, %p1004_p13 }
 0x21f   : > { %v508_v54 = vpop.permute.xlu1 %507  ;;  %v499_v55 = vpop.permute.xlu0 %498 }
 0x223   : > { %v526_v56 = vpop.permute.xlu1 %525  ;;  %v517_v57 = vpop.permute.xlu0 %516 }
 0x227   : > { %v1387_v58 = vpop.permute.xlu0 %539  ;;  %v531_v59 = vpop.permute.xlu1 %530 }
 0x22b   : > { %v943_v60 = vpop.permute.xlu0 %942  ;;  %v933_v61 = vpop.permute.xlu1 %932 }
 0x22c   : > { %v935_v62 = vunpack.i.h.bf16 %v933_v61  ;;  %v945_v9 = vunpack.i.h.bf16 %v943_v60  ;;  %v934_v11 = vunpack.i.l.bf16 %v933_v61  ;;  %v944_v12 = vunpack.i.l.bf16 %v943_v60 }
 0x22e   : > { %v500_v13 = vsel %vm280_vm1, %v935_v62, %v499_v55  ;;  %v518_v22 = vsel %vm300_vm4, %v945_v9, %v517_v57  ;;  %v502_v23 = vsel %vm280_vm1, %v499_v55, %v934_v11  ;;  %v501_v24 = vsel %vm280_vm1, %v934_v11, %v935_v62  ;;  %v581_v11 = vld [vmem:[%s1509_s2] sm:$0xf] }
 0x22f   : > { %v953_v63 = vpop.permute.xlu0 %952  ;;  %v938_v4 = vpop.permute.xlu1 %937  ;;  %v519_v29 = vsel %vm300_vm4, %v944_v12, %v945_v9  ;;  %v520_v37 = vsel %vm300_vm4, %v517_v57, %v944_v12 }
 0x230   : > { %v940_v5 = vunpack.i.h.bf16 %v938_v4  ;;  %v939_v7 = vunpack.i.l.bf16 %v938_v4  ;;  %v955_v18 = vunpack.i.h.bf16 %v953_v63  ;;  %v954_v26 = vunpack.i.l.bf16 %v953_v63 }
 0x232   : > { %v509_v14 = vsel %vm290_vm2, %v940_v5, %v508_v54  ;;  %v511_v15 = vsel %vm290_vm2, %v508_v54, %v939_v7  ;;  %v510_v25 = vsel %vm290_vm2, %v939_v7, %v940_v5  ;;  %v538_v35 = vsel %vm320_vm5, %v955_v18, %v531_v59 }
 0x233   : > { %v568_v16 = vpack.c.bf16 %v509_v14, %v500_v13  ;;  %v948_v17 = vpop.permute.xlu1 %947  ;;  %v958_v19 = vpop.permute.xlu0 %957  ;;  %v566_v27 = vpack.c.bf16 %v511_v15, %v502_v23  ;;  %v567_v32 = vpack.c.bf16 %v510_v25, %v501_v24  ;;  %v536_v6 = vsel %vm320_vm5, %v954_v26, %v955_v18 }
 0x234   : > { %v950_v20 = vunpack.i.h.bf16 %v948_v17  ;;  %v949_v21 = vunpack.i.l.bf16 %v948_v17  ;;  %v960_v38 = vunpack.i.h.bf16 %v958_v19  ;;  %v959_v39 = vunpack.i.l.bf16 %v958_v19 }
 0x235   : > { %816 = vmatpush3.bf16.msra.mxu1 %v568_v16  ;;  %600 = vmatprep.subr.bf16.mxu0 %v567_v32  ;;  %v574_v42 = vpack.c.bf16 %v538_v35, %v1350_v8  ;;  %v537_v46 = vsel %vm320_vm5, %v531_v59, %v954_v26  ;;  %v573_v51 = vpack.c.bf16 %v536_v6, %v1362_v50 }
 0x236   : > { %v527_v28 = vsel %vm310_vm3, %v950_v20, %v526_v56  ;;  %817 = vmatprep.subr.bf16.mxu1 %v1070_v0  ;;  %v529_v31 = vsel %vm310_vm3, %v526_v56, %v949_v21  ;;  %v528_v34 = vsel %vm310_vm3, %v949_v21, %v950_v20  ;;  %601 = vmatpush1.bf16.msra.mxu0 %v566_v27 }
 0x237   : > { %v571_v30 = vpack.c.bf16 %v527_v28, %v518_v22  ;;  %v549_v33 = vpop.permute.xlu1 %548  ;;  %v570_v36 = vpack.c.bf16 %v528_v34, %v519_v29  ;;  %v569_v40 = vpack.c.bf16 %v529_v31, %v520_v37  ;;  %v968_v41 = vpop.permute.xlu0 %967  ;;  %v547_v47 = vsel %vm330_vm7, %v960_v38, %v1387_v58 }
 0x238   : > { %v970_v48 = vunpack.i.h.bf16 %v968_v41  ;;  %v969_v52 = vunpack.i.l.bf16 %v968_v41  ;;  %v545_v53 = vsel %vm330_vm7, %v959_v39, %v960_v38  ;;  %v572_v59 = vpack.c.bf16 %v537_v46, %v1360_v49 }
 0x239   : > { %818 = vmatpush3.bf16.msra.mxu1 %v571_v30  ;;  %602 = vmatprep.subr.bf16.mxu0 %v570_v36  ;;  %v546_v62 = vsel %vm330_vm7, %v1387_v58, %v959_v39 }
 0x23a   : > { %819 = vmatprep.subr.bf16.mxu1 %v1070_v0  ;;  %603 = vmatpush1.bf16.msra.mxu0 %v569_v40  ;;  %v564_v5 = vsel %vm350_vm8, %v969_v52, %v970_v48 }
 0x23b   : > { %v963_v43 = vpop.permute.xlu1 %962  ;;  %604 = vmatprep.subr.bf16.mxu0 %v573_v51  ;;  %v578_v9 = vpack.c.bf16 %v564_v5, %v564_v5 }
 0x23c   : > { %v965_v44 = vunpack.i.h.bf16 %v963_v43  ;;  %v964_v45 = vunpack.i.l.bf16 %v963_v43 }
 0x23d   : > { %820 = vmatpush3.bf16.msra.mxu1 %v574_v42 }
 0x23e   : > { %v556_v8 = vsel %vm340_vm6, %v965_v44, %v549_v33  ;;  %821 = vmatprep.subr.bf16.mxu1 %v1070_v0  ;;  %v554_v54 = vsel %vm340_vm6, %v964_v45, %v965_v44  ;;  %v555_v56 = vsel %vm340_vm6, %v549_v33, %v964_v45  ;;  %605 = vmatpush1.bf16.msra.mxu0 %v572_v59 }
 0x23f   : > { %v577_v55 = vpack.c.bf16 %v556_v8, %v547_v47  ;;  %v562_v50 = vpop.permute.xlu1 %561  ;;  %v576_v57 = vpack.c.bf16 %v554_v54, %v545_v53  ;;  %v575_v4 = vpack.c.bf16 %v555_v56, %v546_v62 }
 0x240   : > { %v563_v60 = vsel %vm350_vm8, %v970_v48, %v562_v50  ;;  %v565_v61 = vsel %vm350_vm8, %v562_v50, %v969_v52 }
 0x241   : > { %v580_v63 = vpack.c.bf16 %v565_v61, %v565_v61  ;;  %822 = vmatpush3.bf16.msra.mxu1 %v577_v55  ;;  %v579_v49 = vpack.c.bf16 %v563_v60, %v563_v60  ;;  %606 = vmatprep.subr.bf16.mxu0 %v576_v57 }
 0x242   : > { %823 = vmatprep.subr.bf16.mxu1 %v1070_v0  ;;  %607 = vmatpush1.bf16.msra.mxu0 %v575_v4  ;;  %v592_v0 = vsel %vm380_vm9, %v578_v9, 0 }
 0x243   : > { %v598_v7 = vsel %vm380_vm9, %v580_v63, 0  ;;  %783 = vmatprep.subr.msk.bf16.mxu0 %vm380_vm9, %v579_v49 }
 0x245   : > { %824 = vmatpush3.bf16.msra.mxu1 %v598_v7 }
 0x246   : > { %609 = vmatpush1.bf16.msra.mxu0 %v592_v0 }
 0x248   : > { %826 = vmatmul.mubr.msk.bf16.vlgmr.msra.gmra.mrb[4].mxu1 %vm376_vm10, %v581_v11  ;;  %v586_v10 = vpop.permute.xlu0 %585 }
 0x249   : > { %784 = vmatmul.mubr.msk.bf16.vlgmr.msra.gmra.mrb[4].mxu0 %vm376_vm10, %v581_v11 }
 0x31b   : > { %v675_v58 = vpop.f32.mrb[4].mxu1 }
 0x31c   : > { %v676_v12 = vadd.f32 %v675_v58, %v586_v10  ;;  %v827_v13 = vpop.f32.mrb[5].mxu1  ;;  %v634_v18 = vpop.f32.mrb[4].mxu0 }
 0x31d   : > { %v678_v14 = vpop.f32.mrb[6].mxu1  ;;  %v635_v19 = vadd.f32 %v634_v18, %v586_v10  ;;  %v636_v20 = vpop.f32.mrb[5].mxu0 }
 0x31e   : > { %v683_v15 = vadd.f32 %v676_v12, %v1227_v1  ;;  %v828_v16 = vpop.f32.mrb[7].mxu1  ;;  %v637_v21 = vadd.f32 %v636_v20, %v586_v10  ;;  %v638_v22 = vpop.f32.mrb[6].mxu0 }
 0x31f   : > { %v681_v23 = vadd.f32 %v635_v19, %v1229_v2  ;;  %v639_v24 = vpop.f32.mrb[7].mxu0 }
 0x320   : > { %v686_v17 = vmax.f32 %v683_v15, 0.0  ;;  %v682_v25 = vadd.f32 %v637_v21, %v1231_v3 }
 0x321   : > { %v684_v1 = vmax.f32 %v681_v23, 0.0 }
 0x322   : > { %689 = vst [vmem:[%s267_s18 + $0x10] sm:$0xff] %v686_v17  ;;  %v685_v26 = vmax.f32 %v682_v25, 0.0 }
 0x323   : > { %687 = vst [vmem:[%s267_s18] sm:$0xff] %v684_v1 }
 0x324   : > { %688 = vst [vmem:[%s267_s18 + $0x8] sm:$0xff] %v685_v26 }
 0x325   : > { %1014 = shalt.err (!%p1011_p4)
}
 0x326   : > { %s1015_s20 = scalar_lea.hbm %s1463_s17, 384  ;;  %s1019_s15 = scalar_lea.hbm %s1513_s6, 768 }
 0x327   : > { %p1016_p7 = scmp.ne.s32.totalorder %s1463_s17, %s1015_s20  ;;  %p1020_p0 = scmp.lt.u32.totalorder %s1463_s17, %s1513_s6 }
 0x328   : > { %p1021_p1 = scmp.lt.u32.totalorder %s1019_s15, %s1015_s20  ;;  %p1023_p6 = scmp.lt.u32.totalorder %s1015_s20, %s1463_s17 }
 0x329   : > { %p1017_p8 = pnand %p1016_p7, %p1521_p11 }
 0x32a   : > { %p1022_p3 = por %p1021_p1, %p1020_p0 }
 0x32b   : > { %p1018_p9 = pneg %p1017_p8 }
 0x32c   : > { %p1024_p12 = por %p1023_p6, %p1022_p3 }
 0x32e   : > { %p1025_p13 = pnand %p1024_p12, %p1018_p9 }
 0x330   : > { %1028 = shalt.err (!%p1025_p13)
}
 0x331   : > { %835 = dma.vmem_to_hbm [thread:$0]  (%p1521_p11), %s1465_s11, 384, %s1463_s17, %s691_s25  }
 0x332 PF: > { %s717_s29 = sand.u32 1, %s1055_s21   ;;  %p1522_p5 = scmp.ne.s32.totalorder %s1517_s9, 0 }
 0x333   : > { %p1523_p10 = scmp.ge.s32.totalorder %s1067_s24, 2  ;;  %s718_s13 = scalar_lea.sflag [#allocation4], %s717_s29 }
 0x335   : > { %p842_p2 = pnand %p1523_p10, %p1522_p5 }
 0x337   : > { %1050 = dma.done.wait (!%p842_p2), %s718_s13, 384  }
 0x338   : > { %1052 = vsyncadd (!%p842_p2), %s718_s13, 4294966912  ;;  %p19_p4 = scmp.ge.s32.totalorder %s1142_s27, 4   ;;  %s1524_s21 = smov %s1059_s22 }
 0x339   : > { %s1525_s22 = smov %s1063_s23  ;;  %s1526_s23 = smov %s1154_s30 }
 0x33a   : > { %s1527_s24 = smov %s1142_s27  ;;  %21 = sbr.rel (!%p19_p4) target bundleno = 5 (0x5), region = 89 }
 0x341   :  { %723 = vsyncpa [#allocation3], 1 }
 0x342   :  { %725 = vsyncpa [#allocation3 + $0x1], 1 }
 0x343   :  { %726 = vsyncpa [#allocation4], 1 }
 0x344   :  { %728 = vsyncpa [#allocation4 + $0x1], 1 }

</bundles_post_ra>
